<compile_context>
chip_gen: v7x
topology: tpu7x:2x2x1
jax: 0.10.0
libtpu: 0.0.40
codegen_flags: <defaults>
</compile_context>

<pallas_src>
import numpy as np
import jax
import jax.numpy as jnp
from jax.experimental import pallas as pl
from jax.experimental.pallas import tpu as pltpu

_LANE = 1024        # lane width of the flattened slab (multiple of 128)
_BLOCK_ROWS = 512   # 512*1024*4 B = 2 MiB per block; in+out double-buffered ~ 8 MiB


def _floor_even_kernel(x_ref, o_ref):
    # Truncate-toward-zero cast (== torch .long()), then clear bit 0.
    # p & -2 == p - (p mod 2): the unique parity-matching {-1,0}^3 offset.
    o_ref[...] = x_ref[...].astype(jnp.int32) & jnp.int32(-2)


def _floor_even_slab(flat2d):
    """flat2d: (R, _LANE) float32 -> (R, _LANE) int32, elementwise trunc(x) & -2."""
    n_rows = flat2d.shape[0]
    # Block sublane dim must be a multiple of 8 or equal the full dim.
    block_rows = _BLOCK_ROWS if n_rows >= _BLOCK_ROWS else n_rows
    grid = (pl.cdiv(n_rows, block_rows),)   # partial last block handled by masking
    return pl.pallas_call(
        _floor_even_kernel,
        out_shape=jax.ShapeDtypeStruct((n_rows, _LANE), jnp.int32),
        grid=grid,
        in_specs=[pl.BlockSpec((block_rows, _LANE), lambda i: (i, 0))],
        out_specs=pl.BlockSpec((block_rows, _LANE), lambda i: (i, 0)),
        compiler_params=pltpu.CompilerParams(
            dimension_semantics=("parallel",)),
    )(flat2d)


@jax.jit
def _device_candidates(x):
    """x: (N, 3) float -> (R, _LANE) int32 slab of floor-to-even candidates."""
    n_flat = x.shape[0] * x.shape[1]
    n_rows = (n_flat + _LANE - 1) // _LANE
    flat = jnp.reshape(x.astype(jnp.float32), (-1,))       # free: contiguous reshape
    pad = n_rows * _LANE - n_flat
    if pad:
        # TODO(synk): tail pad costs one extra HBM pass; negligible vs D2H + host unique.
        flat = jnp.pad(flat, (0, pad))
    return _floor_even_slab(jnp.reshape(flat, (n_rows, _LANE)))


def calculate_grid(x):
    """JAX/Pallas equivalent of MyModel.forward (CalculateGrid.apply)."""
    x = jnp.asarray(x)
    n = x.shape[0]
    slab = _device_candidates(x)                  # (R, _LANE) int32, lane-dense
    cand = np.asarray(jax.device_get(slab))       # single D2H transfer (syncs)
    rows = cand.reshape(-1)[: 3 * n].reshape(n, 3)
    rows = rows[rows.min(axis=1) >= 0]            # validity filter on host
    # TODO(synk): torch.unique has a data-dependent output shape, so dedup/sort must
    # stay on host; for very large N pack the 3 coords into one int key on device to
    # cut D2H bytes ~3x and switch to a 1-D np.unique.
    uniq = np.unique(rows, axis=0)                # sorted, like torch.unique(dim=0)
    return uniq.astype(np.float32) + 0.5


def _reference(pos_np):
    """Direct NumPy transcription of the PyTorch forward (for verification)."""
    filt = np.array([[-1, -1, -1], [-1, -1, 0], [-1, 0, -1], [-1, 0, 0],
                     [0, -1, -1], [0, -1, 0], [0, 0, -1], [0, 0, 0]], dtype=np.int64)
    p = pos_np.astype(np.int64)
    out = np.repeat(p, 8, axis=0) + np.tile(filt, (p.shape[0], 1))
    out = out[out.min(axis=1) >= 0]
    out = out[~((out % 2) != 0).any(axis=1)]
    out = np.unique(out, axis=0)
    return out.astype(np.float32) + 0.5


if __name__ == "__main__":
    key = jax.random.PRNGKey(0)
    num_points = 16
    # Integer grid coordinates in [0, 10), like the export script's randint input.
    x = jax.random.randint(key, (num_points, 3), 0, 10).astype(jnp.float32)

    out = calculate_grid(x)
    out = jax.block_until_ready(out)   # result is already host-resident; kernel synced in device_get

    ref = _reference(np.asarray(x))
    assert out.shape == ref.shape, (out.shape, ref.shape)
    assert np.allclose(out, ref), "mismatch vs reference"
    print("KERNEL_OK")
</pallas_src>

<mosaic_0001>
module attributes {stable_mosaic.version = 11 : i64} {
  func.func @_floor_even_kernel(%arg0: i32, %arg1: memref<1x1024xf32, #tpu.memory_space<vmem>>, %arg2: memref<1x1024xi32, #tpu.memory_space<vmem>>) attributes {dimension_semantics = [#tpu.dimension_semantics<parallel>], iteration_bounds = array<i64: 1>, scalar_prefetch = 0 : i64, scratch_operands = 0 : i64, tpu.core_type = #tpu.core_type<tc>, window_params = [{transform_indices = @transform_0, window_bounds = array<i64: 1, 1024>}, {transform_indices = @transform_1, window_bounds = array<i64: 1, 1024>}]} {
    %c0 = arith.constant 0 : index
    %c0_0 = arith.constant 0 : index
    %0 = vector.load %arg1[%c0, %c0_0] : memref<1x1024xf32, #tpu.memory_space<vmem>>, vector<1x1024xf32>
    %1 = arith.fptosi %0 : vector<1x1024xf32> to vector<1x1024xi32>
    %c-2_i32 = arith.constant -2 : i32
    %2 = vector.broadcast %c-2_i32 : i32 to vector<1x1024xi32>
    %3 = arith.andi %1, %2 : vector<1x1024xi32>
    %c0_1 = arith.constant 0 : index
    %c0_2 = arith.constant 0 : index
    %4 = vector.load %arg2[%c0_1, %c0_2] : memref<1x1024xi32, #tpu.memory_space<vmem>>, vector<1x1024xi32>
    tpu.vector_store %arg2[%c0_1, %c0_2], %3 {strides = array<i32>} : memref<1x1024xi32, #tpu.memory_space<vmem>>, vector<1x1024xi32>,
    return
  }
  func.func @transform_0(%arg0: i32) -> (i32, i32) {
    %c0_i32 = arith.constant 0 : i32
    %c0_i32_0 = arith.constant 0 : i32
    return %arg0, %c0_i32 : i32, i32
  }
  func.func @transform_1(%arg0: i32) -> (i32, i32) {
    %c0_i32 = arith.constant 0 : i32
    %c0_i32_0 = arith.constant 0 : i32
    return %arg0, %c0_i32 : i32, i32
  }
}

</mosaic_0001>

<bundles_post_ra>
// kernel: _device_candidates.1
= control target key start
LH: loop header
LB: loop body
LE: loop exit
PB: predicated region body
PF: predicated region fallthrough
CT: control target
= control target key end

     0   :  { %s80_s0 = inlined_call_operand.vmem [shape: f32[1,1024], index: 0, kind: input, shape index: {}]   ;;  %s81_s1 = inlined_call_operand.hbm [shape: s32[1,1024], index: 1, kind: output, shape index: {}]  }
   0x1   :  { %v9_v0 = vld [vmem:[%s80_s0] sm:$0xff] }
   0x2   :  { %6 = vsyncpa [#allocation3], 0  ;;  %v27_v1 = vtrunc.f32 %v9_v0  ;;  %s54_s8 = smov [#allocation2]  }
   0x3   :  { %s19_s9 = sshll.u32 %s54_s8, 4  ;;  %s20_s9 = int_to_ptr.vmem [resolvable:$true] %s19_s9 }
   0x4   :  { %v28_v2 = vcvt.f32.s32 %v27_v1  ;;  %s30_s10 = scalar_lea.vmem %s20_s9, 128  ;;  %p35_p1 = scmp.lt.s32.totalorder %s20_s9, %s20_s9 }
   0x5   :  { %p31_p0 = scmp.ne.s32.totalorder %s20_s9, %s30_s10  ;;  %p36_p2 = scmp.lt.s32.totalorder %s30_s10, %s30_s10 }
   0x6   :  { %v11_v3 = vand.u32 4294967294, %v28_v2 }
   0x7   :  { %p37_p3 = por %p36_p2, %p35_p1 }
   0x8   :  { %12 = vst [vmem:[#allocation2] sm:$0xff] %v11_v3 }
   0x9   :  { %p38_p4 = pnand %p37_p3, %p31_p0 }
   0xb   :  { %41 = shalt.err (!%p38_p4)
}
   0xc   :  { %s42_s13 = scalar_lea.hbm %s81_s1, 128 }
   0xd   :  { %p43_p5 = scmp.ne.s32.totalorder %s81_s1, %s42_s13  ;;  %p46_p6 = scmp.lt.u32.totalorder %s42_s13, %s81_s1 }
   0xf   :  { %p48_p7 = pnand %p46_p6, %p43_p5 }
  0x11   :  { %51 = shalt.err (!%p48_p7)
}
  0x12   :  { %22 = dma.vmem_to_hbm [thread:$0]  %s20_s9, 128, %s81_s1, [#allocation3]  }
  0x13   :  { %52 = dma.done.wait [#allocation3], 128  }
  0x14   :  { %53 = vsyncadd [#allocation3], 4294967168 }
  0x15   :  { %26 = vsyncpa [#allocation3], 1 }

</bundles_post_ra>
